<compile_context>
chip_gen: v7x
topology: tpu7x:2x2x1
jax: 0.10.0
libtpu: 0.0.40
codegen_flags: <defaults>
</compile_context>

<pallas_src>
import functools
import math

import jax
import jax.numpy as jnp
from jax.experimental import pallas as pl
from jax.experimental.pallas import tpu as pltpu

LN_EPS = 1e-5
K_S, P_S = 5, 2      # seasonal conv: kernel_size=5,  padding=2
K_T, P_T = 30, 7     # trend conv:    kernel_size=30, padding=7

MXU_TREND_MAX_L = 1024   # use Toeplitz/MXU trend conv up to this L (fits v7x VMEM)
# TODO(synk): on v5e (cheap VPU/XLU, 197 TF/s MXU) the crossover is higher; a
#             per-generation threshold could keep shift-FMA preferred there.


def _round_up(a, b):
    return ((a + b - 1) // b) * b


# --------------------------------------------------------------------------
# Pallas kernel
# --------------------------------------------------------------------------
def _nnstl_kernel(*refs, use_mxu_trend):
    if use_mxu_trend:
        (x_ref, w_s_ref, b_s_ref, w_t_ref, b_t_ref,
         ln_g_ref, ln_b_ref, tt_ref, seasonal_ref, trend_ref) = refs
    else:
        (x_ref, w_s_ref, b_s_ref, w_t_ref, b_t_ref,
         ln_g_ref, ln_b_ref, seasonal_ref, trend_ref) = refs
        tt_ref = None

    x = x_ref[...]                                  # (TB, L) f32
    L = x.shape[1]
    L_t = L + 2 * P_T - K_T + 1                     # valid trend length (L - 15)

    # (1, L) iota / masks: broadcast over the batch (sublane) dim.
    lane = jax.lax.broadcasted_iota(jnp.int32, (1, L), 1)
    gamma = ln_g_ref[...]                           # (1, L)
    beta = ln_b_ref[...]                            # (1, L)

    def conv_shift_fma(v, w_ref, k_size, pad, bias):
        """out[t] = bias + sum_j w[j] * v[t + j - pad]   (zero-padded edges)."""
        acc = jnp.zeros_like(v)
        for j in range(k_size):                     # static unroll (few taps)
            d = j - pad
            if d == 0:
                acc = acc + w_ref[j] * v
                continue
            shifted = pltpu.roll(v, shift=(-d) % L, axis=1)
            # only one edge can wrap for a given sign of d
            valid = (lane < L - d) if d > 0 else (lane >= -d)
            acc = acc + w_ref[j] * jnp.where(valid, shifted, 0.0)
        return acc + bias

    # --- seasonal = LayerNorm(Conv1d(k=5, pad=2)(x)); norm over all L lanes ---
    s = conv_shift_fma(x, w_s_ref, K_S, P_S, b_s_ref[0])
    mean_s = jnp.mean(s, axis=-1, keepdims=True)
    var_s = jnp.mean(jnp.square(s - mean_s), axis=-1, keepdims=True)
    s_n = (s - mean_s) * jax.lax.rsqrt(var_s + LN_EPS) * gamma + beta
    seasonal_ref[...] = s_n

    # --- trend = LayerNorm(Conv1d(k=30, pad=7)(seasonal)); valid width L - 15 ---
    if use_mxu_trend:
        # Banded-Toeplitz conv on the MXU; columns >= L_t of tt are zero.
        t = jnp.dot(s_n, tt_ref[...], preferred_element_type=jnp.float32) + b_t_ref[0]
    else:
        # TODO(synk): for very long L a chunked fori_loop would bound live
        #             ranges; the static unroll is fine at shipped sizes.
        t = conv_shift_fma(s_n, w_t_ref, K_T, P_T, b_t_ref[0])

    out_valid = (lane < L_t).astype(jnp.float32)    # (1, L)
    inv_lt = 1.0 / L_t
    mean_t = jnp.sum(t * out_valid, axis=-1, keepdims=True) * inv_lt
    diff = (t - mean_t) * out_valid
    var_t = jnp.sum(diff * diff, axis=-1, keepdims=True) * inv_lt
    t_n = (t - mean_t) * jax.lax.rsqrt(var_t + LN_EPS) * gamma + beta
    # lane-dense (full 128-wide) store; columns >= L_t are sliced off outside.
    trend_ref[...] = t_n * out_valid


# --------------------------------------------------------------------------
# Wrapper helpers
# --------------------------------------------------------------------------
def _trend_toeplitz(w_t, L):
    """(L, L) banded matrix T with (s_n @ T)[:, t] = trend conv output at t."""
    L_t = L + 2 * P_T - K_T + 1
    i = jnp.arange(L)[:, None]           # input index (rows)
    t = jnp.arange(L)[None, :]           # output index (cols)
    j = i - t + P_T                      # tap index
    valid = (j >= 0) & (j < K_T) & (t < L_t)
    return jnp.where(valid, w_t[jnp.clip(j, 0, K_T - 1)], 0.0).astype(jnp.float32)


def _pick_tile_b(b8, L, use_mxu_trend):
    """Batch-tile rows from a conservative (v7x-safe) VMEM budget."""
    budget = 24 << 20                            # bytes of scoped VMEM we target
    toeplitz = 2 * L * L * 4 if use_mxu_trend else 0
    per_row = 12 * L * 4                         # 2 in + 4 out pipeline bufs + ~6 live temps
    cap = max(8, ((budget - toeplitz) // per_row) // 8 * 8)
    cap = min(cap, 512)
    tile_b = min(cap, b8)
    if b8 >= 16:
        # keep >= 2 grid steps so v7x's two TensorCores both get work
        tile_b = min(tile_b, _round_up(pl.cdiv(b8, 2), 8))
    return max(8, tile_b)


# --------------------------------------------------------------------------
# Wrapper
# --------------------------------------------------------------------------
@jax.jit
def nnstl_forward(x, params):
    B, L = x.shape
    if L < K_T:
        raise ValueError(f"sequence_length must be >= {K_T}, got {L}")
    L_t = L + 2 * P_T - K_T + 1

    use_mxu_trend = L <= MXU_TREND_MAX_L

    b8 = _round_up(B, 8)                         # sublane alignment only (<= 7 rows)
    x_p = x if b8 == B else jnp.pad(x, ((0, b8 - B), (0, 0)))
    tile_b = _pick_tile_b(b8, L, use_mxu_trend)
    grid = (pl.cdiv(b8, tile_b),)                # partial last block ok: rows independent

    smem = pl.BlockSpec(memory_space=pltpu.MemorySpace.SMEM)
    row_spec = pl.BlockSpec((1, L), lambda i: (0, 0))
    tile_spec = pl.BlockSpec((tile_b, L), lambda i: (i, 0))

    in_specs = [tile_spec,   # x tile      (tile_b, L)
                smem,        # w_seasonal  (5,)
                smem,        # b_seasonal  (1,)
                smem,        # w_trend     (30,)
                smem,        # b_trend     (1,)
                row_spec,    # ln_gamma    (1, L)
                row_spec]    # ln_beta     (1, L)
    args = [x_p, params["w_seasonal"], params["b_seasonal"],
            params["w_trend"], params["b_trend"],
            params["ln_gamma"], params["ln_beta"]]
    if use_mxu_trend:
        in_specs.append(pl.BlockSpec((L, L), lambda i: (0, 0)))   # Toeplitz, resident
        args.append(_trend_toeplitz(params["w_trend"], L))

    toeplitz_bytes = 2 * L * L * 4 if use_mxu_trend else 0
    vmem_bytes = toeplitz_bytes + 12 * tile_b * L * 4 + (4 << 20)
    vmem_limit = int(min(48 << 20, max(8 << 20, vmem_bytes)))

    seasonal_p, trend_p = pl.pallas_call(
        functools.partial(_nnstl_kernel, use_mxu_trend=use_mxu_trend),
        out_shape=(jax.ShapeDtypeStruct((b8, L), jnp.float32),
                   jax.ShapeDtypeStruct((b8, L), jnp.float32)),
        grid=grid,
        in_specs=in_specs,
        out_specs=(tile_spec, tile_spec),
        compiler_params=pltpu.CompilerParams(
            dimension_semantics=("parallel",),
            vmem_limit_bytes=vmem_limit),
    )(*args)

    seasonal = seasonal_p if b8 == B else seasonal_p[:B]
    trend = trend_p[:, :L_t] if b8 == B else trend_p[:B, :L_t]
    return seasonal, trend


# --------------------------------------------------------------------------
# Pure-JAX reference (same resolution of the trend-LayerNorm shape issue)
# --------------------------------------------------------------------------
def nnstl_reference(x, params):
    xb = x[:, None, :]                                    # (B, 1, L)

    def conv1d(inp, w, b, pad):
        out = jax.lax.conv_general_dilated(
            inp, w[None, None, :], window_strides=(1,), padding=[(pad, pad)],
            dimension_numbers=("NCH", "OIH", "NCH"))
        return out + b[0]

    def layer_norm(v, g, b):
        mean = jnp.mean(v, axis=(-2, -1), keepdims=True)
        var = jnp.mean(jnp.square(v - mean), axis=(-2, -1), keepdims=True)
        return (v - mean) * jax.lax.rsqrt(var + LN_EPS) * g[None] + b[None]

    s = conv1d(xb, params["w_seasonal"], params["b_seasonal"], P_S)
    s = layer_norm(s, params["ln_gamma"], params["ln_beta"])
    t = conv1d(s, params["w_trend"], params["b_trend"], P_T)
    L_t = t.shape[-1]
    t = layer_norm(t, params["ln_gamma"][:, :L_t], params["ln_beta"][:, :L_t])
    return s[:, 0, :], t[:, 0, :]


# --------------------------------------------------------------------------
if __name__ == "__main__":
    B, L = 4, 128                                         # sequence_length = 128
    key = jax.random.PRNGKey(0)
    k_ws, k_bs, k_wt, k_bt, k_g, k_b, k_x = jax.random.split(key, 7)

    bound_s = 1.0 / math.sqrt(1 * K_S)
    bound_t = 1.0 / math.sqrt(1 * K_T)
    params = {
        "w_seasonal": jax.random.uniform(k_ws, (K_S,), jnp.float32, -bound_s, bound_s),
        "b_seasonal": jax.random.uniform(k_bs, (1,), jnp.float32, -bound_s, bound_s),
        "w_trend":    jax.random.uniform(k_wt, (K_T,), jnp.float32, -bound_t, bound_t),
        "b_trend":    jax.random.uniform(k_bt, (1,), jnp.float32, -bound_t, bound_t),
        # non-trivial affine params to exercise the gamma/beta path
        "ln_gamma":   1.0 + 0.1 * jax.random.normal(k_g, (1, L), jnp.float32),
        "ln_beta":    0.1 * jax.random.normal(k_b, (1, L), jnp.float32),
    }

    x = jax.random.normal(k_x, (B, L), jnp.float32)

    seasonal, trend = nnstl_forward(x, params)
    seasonal = jax.block_until_ready(seasonal)
    trend = jax.block_until_ready(trend)

    s_ref, t_ref = nnstl_reference(x, params)
    assert seasonal.shape == (B, L) and trend.shape == (B, L - 15)
    assert jnp.allclose(seasonal, s_ref, atol=5e-3, rtol=5e-3), \
        float(jnp.max(jnp.abs(seasonal - s_ref)))
    assert jnp.allclose(trend, t_ref, atol=5e-3, rtol=5e-3), \
        float(jnp.max(jnp.abs(trend - t_ref)))

    print("KERNEL_OK")
</pallas_src>

<mosaic_0001>
module attributes {stable_mosaic.version = 11 : i64} {
  func.func @_nnstl_kernel(%arg0: i32, %arg1: memref<8x128xf32, #tpu.memory_space<vmem>>, %arg2: memref<5xf32, #tpu.memory_space<smem>>, %arg3: memref<1xf32, #tpu.memory_space<smem>>, %arg4: memref<30xf32, #tpu.memory_space<smem>>, %arg5: memref<1xf32, #tpu.memory_space<smem>>, %arg6: memref<1x128xf32, #tpu.memory_space<vmem>>, %arg7: memref<1x128xf32, #tpu.memory_space<vmem>>, %arg8: memref<128x128xf32, #tpu.memory_space<vmem>>, %arg9: memref<8x128xf32, #tpu.memory_space<vmem>>, %arg10: memref<8x128xf32, #tpu.memory_space<vmem>>) attributes {dimension_semantics = [#tpu.dimension_semantics<parallel>], iteration_bounds = array<i64: 1>, scalar_prefetch = 0 : i64, scratch_operands = 0 : i64, tpu.core_type = #tpu.core_type<tc>, window_params = [{transform_indices = @transform_0, window_bounds = array<i64: 8, 128>}, {transform_indices = @transform_1, window_bounds = array<i64: 5>}, {transform_indices = @transform_2, window_bounds = array<i64: 1>}, {transform_indices = @transform_3, window_bounds = array<i64: 30>}, {transform_indices = @transform_4, window_bounds = array<i64: 1>}, {pipeline_mode = #tpu.pipeline_mode<synchronous>, transform_indices = @transform_5, window_bounds = array<i64: 1, 128>}, {pipeline_mode = #tpu.pipeline_mode<synchronous>, transform_indices = @transform_6, window_bounds = array<i64: 1, 128>}, {pipeline_mode = #tpu.pipeline_mode<synchronous>, transform_indices = @transform_7, window_bounds = array<i64: 128, 128>}, {transform_indices = @transform_8, window_bounds = array<i64: 8, 128>}, {transform_indices = @transform_9, window_bounds = array<i64: 8, 128>}]} {
    %c0 = arith.constant 0 : index
    %c0_0 = arith.constant 0 : index
    %0 = vector.load %arg1[%c0, %c0_0] : memref<8x128xf32, #tpu.memory_space<vmem>>, vector<8x128xf32>
    %1 = tpu.iota {dimensions = array<i32: 1>} : vector<1x128xi32>
    %c0_1 = arith.constant 0 : index
    %c0_2 = arith.constant 0 : index
    %2 = vector.load %arg6[%c0_1, %c0_2] : memref<1x128xf32, #tpu.memory_space<vmem>>, vector<1x128xf32>
    %c0_3 = arith.constant 0 : index
    %c0_4 = arith.constant 0 : index
    %3 = vector.load %arg7[%c0_3, %c0_4] : memref<1x128xf32, #tpu.memory_space<vmem>>, vector<1x128xf32>
    %c0_5 = arith.constant 0 : index
    %4 = memref.load %arg3[%c0_5] : memref<1xf32, #tpu.memory_space<smem>>
    %cst = arith.constant 0.000000e+00 : f32
    %5 = vector.broadcast %cst : f32 to vector<8x128xf32>
    %c2_i32 = arith.constant 2 : i32
    %6 = tpu.dynamic_rotate %0 by %c2_i32 dim 1 : vector<8x128xf32>, i32 -> vector<8x128xf32>
    %c2_i32_6 = arith.constant 2 : i32
    %7 = vector.broadcast %c2_i32_6 : i32 to vector<1x128xi32>
    %8 = arith.cmpi sge, %1, %7 : vector<1x128xi32>
    %c0_7 = arith.constant 0 : index
    %9 = memref.load %arg2[%c0_7] : memref<5xf32, #tpu.memory_space<smem>>
    %cst_8 = arith.constant 0.000000e+00 : f32
    %10 = vector.shape_cast %8 : vector<1x128xi1> to vector<1x128xi1>
    %11 = vector.broadcast %10 : vector<1x128xi1> to vector<8x128xi1>
    %12 = vector.broadcast %cst_8 : f32 to vector<8x128xf32>
    %13 = arith.select %11, %6, %12 : vector<8x128xi1>, vector<8x128xf32>
    %14 = vector.broadcast %9 : f32 to vector<8x128xf32>
    %15 = arith.mulf %14, %13 : vector<8x128xf32>
    %16 = arith.addf %5, %15 : vector<8x128xf32>
    %c1_i32 = arith.constant 1 : i32
    %17 = tpu.dynamic_rotate %0 by %c1_i32 dim 1 : vector<8x128xf32>, i32 -> vector<8x128xf32>
    %c1_i32_9 = arith.constant 1 : i32
    %18 = vector.broadcast %c1_i32_9 : i32 to vector<1x128xi32>
    %19 = arith.cmpi sge, %1, %18 : vector<1x128xi32>
    %c1 = arith.constant 1 : index
    %20 = memref.load %arg2[%c1] : memref<5xf32, #tpu.memory_space<smem>>
    %cst_10 = arith.constant 0.000000e+00 : f32
    %21 = vector.shape_cast %19 : vector<1x128xi1> to vector<1x128xi1>
    %22 = vector.broadcast %21 : vector<1x128xi1> to vector<8x128xi1>
    %23 = vector.broadcast %cst_10 : f32 to vector<8x128xf32>
    %24 = arith.select %22, %17, %23 : vector<8x128xi1>, vector<8x128xf32>
    %25 = vector.broadcast %20 : f32 to vector<8x128xf32>
    %26 = arith.mulf %25, %24 : vector<8x128xf32>
    %27 = arith.addf %16, %26 : vector<8x128xf32>
    %c2 = arith.constant 2 : index
    %28 = memref.load %arg2[%c2] : memref<5xf32, #tpu.memory_space<smem>>
    %29 = vector.broadcast %28 : f32 to vector<8x128xf32>
    %30 = arith.mulf %29, %0 : vector<8x128xf32>
    %31 = arith.addf %27, %30 : vector<8x128xf32>
    %c127_i32 = arith.constant 127 : i32
    %32 = tpu.dynamic_rotate %0 by %c127_i32 dim 1 : vector<8x128xf32>, i32 -> vector<8x128xf32>
    %c127_i32_11 = arith.constant 127 : i32
    %33 = vector.broadcast %c127_i32_11 : i32 to vector<1x128xi32>
    %34 = arith.cmpi slt, %1, %33 : vector<1x128xi32>
    %c3 = arith.constant 3 : index
    %35 = memref.load %arg2[%c3] : memref<5xf32, #tpu.memory_space<smem>>
    %cst_12 = arith.constant 0.000000e+00 : f32
    %36 = vector.shape_cast %34 : vector<1x128xi1> to vector<1x128xi1>
    %37 = vector.broadcast %36 : vector<1x128xi1> to vector<8x128xi1>
    %38 = vector.broadcast %cst_12 : f32 to vector<8x128xf32>
    %39 = arith.select %37, %32, %38 : vector<8x128xi1>, vector<8x128xf32>
    %40 = vector.broadcast %35 : f32 to vector<8x128xf32>
    %41 = arith.mulf %40, %39 : vector<8x128xf32>
    %42 = arith.addf %31, %41 : vector<8x128xf32>
    %c126_i32 = arith.constant 126 : i32
    %43 = tpu.dynamic_rotate %0 by %c126_i32 dim 1 : vector<8x128xf32>, i32 -> vector<8x128xf32>
    %c126_i32_13 = arith.constant 126 : i32
    %44 = vector.broadcast %c126_i32_13 : i32 to vector<1x128xi32>
    %45 = arith.cmpi slt, %1, %44 : vector<1x128xi32>
    %c4 = arith.constant 4 : index
    %46 = memref.load %arg2[%c4] : memref<5xf32, #tpu.memory_space<smem>>
    %cst_14 = arith.constant 0.000000e+00 : f32
    %47 = vector.shape_cast %45 : vector<1x128xi1> to vector<1x128xi1>
    %48 = vector.broadcast %47 : vector<1x128xi1> to vector<8x128xi1>
    %49 = vector.broadcast %cst_14 : f32 to vector<8x128xf32>
    %50 = arith.select %48, %43, %49 : vector<8x128xi1>, vector<8x128xf32>
    %51 = vector.broadcast %46 : f32 to vector<8x128xf32>
    %52 = arith.mulf %51, %50 : vector<8x128xf32>
    %53 = arith.addf %42, %52 : vector<8x128xf32>
    %54 = vector.broadcast %4 : f32 to vector<8x128xf32>
    %55 = arith.addf %53, %54 : vector<8x128xf32>
    %cst_15 = arith.constant dense<0.000000e+00> : vector<8xf32>
    %56 = vector.multi_reduction <add>, %55, %cst_15 [1] : vector<8x128xf32> to vector<8xf32>
    %57 = vector.shape_cast %56 : vector<8xf32> to vector<8x1xf32>
    %cst_16 = arith.constant 1.280000e+02 : f32
    %58 = vector.broadcast %cst_16 : f32 to vector<8x1xf32>
    %59 = arith.divf %57, %58 : vector<8x1xf32>
    %60 = vector.broadcast %59 : vector<8x1xf32> to vector<8x128xf32>
    %61 = arith.subf %55, %60 : vector<8x128xf32>
    %62 = arith.mulf %61, %61 : vector<8x128xf32>
    %cst_17 = arith.constant dense<0.000000e+00> : vector<8xf32>
    %63 = vector.multi_reduction <add>, %62, %cst_17 [1] : vector<8x128xf32> to vector<8xf32>
    %64 = vector.shape_cast %63 : vector<8xf32> to vector<8x1xf32>
    %cst_18 = arith.constant 1.280000e+02 : f32
    %65 = vector.broadcast %cst_18 : f32 to vector<8x1xf32>
    %66 = arith.divf %64, %65 : vector<8x1xf32>
    %67 = vector.broadcast %59 : vector<8x1xf32> to vector<8x128xf32>
    %68 = arith.subf %55, %67 : vector<8x128xf32>
    %cst_19 = arith.constant 9.99999974E-6 : f32
    %69 = vector.broadcast %cst_19 : f32 to vector<8x1xf32>
    %70 = arith.addf %66, %69 : vector<8x1xf32>
    %71 = math.rsqrt %70 : vector<8x1xf32>
    %72 = vector.broadcast %71 : vector<8x1xf32> to vector<8x128xf32>
    %73 = arith.mulf %68, %72 : vector<8x128xf32>
    %74 = vector.broadcast %2 : vector<1x128xf32> to vector<8x128xf32>
    %75 = arith.mulf %73, %74 : vector<8x128xf32>
    %76 = vector.broadcast %3 : vector<1x128xf32> to vector<8x128xf32>
    %77 = arith.addf %75, %76 : vector<8x128xf32>
    %c0_20 = arith.constant 0 : index
    %c0_21 = arith.constant 0 : index
    %78 = vector.load %arg9[%c0_20, %c0_21] : memref<8x128xf32, #tpu.memory_space<vmem>>, vector<8x128xf32>
    tpu.vector_store %arg9[%c0_20, %c0_21], %77 {strides = array<i32>} : memref<8x128xf32, #tpu.memory_space<vmem>>, vector<8x128xf32>,
    %c0_22 = arith.constant 0 : index
    %c0_23 = arith.constant 0 : index
    %79 = vector.load %arg8[%c0_22, %c0_23] : memref<128x128xf32, #tpu.memory_space<vmem>>, vector<128x128xf32>
    %cst_24 = arith.constant dense<0.000000e+00> : vector<8x128xf32>
    %80 = tpu.matmul %77, %79, %cst_24 {dimension_numbers = #tpu.dot_dimension_numbers<[1], [0], [0], [1], [0, 0, 1, 1], [], []>} : vector<8x128xf32>, vector<128x128xf32>, vector<8x128xf32> -> vector<8x128xf32>
    %c0_25 = arith.constant 0 : index
    %81 = memref.load %arg5[%c0_25] : memref<1xf32, #tpu.memory_space<smem>>
    %82 = vector.broadcast %81 : f32 to vector<8x128xf32>
    %83 = arith.addf %80, %82 : vector<8x128xf32>
    %c113_i32 = arith.constant 113 : i32
    %84 = vector.broadcast %c113_i32 : i32 to vector<1x128xi32>
    %85 = arith.cmpi slt, %1, %84 : vector<1x128xi32>
    %86 = arith.extui %85 : vector<1x128xi1> to vector<1x128xi32>
    %87 = arith.sitofp %86 : vector<1x128xi32> to vector<1x128xf32>
    %88 = vector.broadcast %87 : vector<1x128xf32> to vector<8x128xf32>
    %89 = arith.mulf %83, %88 : vector<8x128xf32>
    %cst_26 = arith.constant dense<0.000000e+00> : vector<8xf32>
    %90 = vector.multi_reduction <add>, %89, %cst_26 [1] : vector<8x128xf32> to vector<8xf32>
    %91 = vector.shape_cast %90 : vector<8xf32> to vector<8x1xf32>
    %cst_27 = arith.constant 0.00884955748 : f32
    %92 = vector.broadcast %cst_27 : f32 to vector<8x1xf32>
    %93 = arith.mulf %91, %92 : vector<8x1xf32>
    %94 = vector.broadcast %93 : vector<8x1xf32> to vector<8x128xf32>
    %95 = arith.subf %83, %94 : vector<8x128xf32>
    %96 = vector.broadcast %87 : vector<1x128xf32> to vector<8x128xf32>
    %97 = arith.mulf %95, %96 : vector<8x128xf32>
    %98 = arith.mulf %97, %97 : vector<8x128xf32>
    %cst_28 = arith.constant dense<0.000000e+00> : vector<8xf32>
    %99 = vector.multi_reduction <add>, %98, %cst_28 [1] : vector<8x128xf32> to vector<8xf32>
    %100 = vector.shape_cast %99 : vector<8xf32> to vector<8x1xf32>
    %cst_29 = arith.constant 0.00884955748 : f32
    %101 = vector.broadcast %cst_29 : f32 to vector<8x1xf32>
    %102 = arith.mulf %100, %101 : vector<8x1xf32>
    %103 = vector.broadcast %93 : vector<8x1xf32> to vector<8x128xf32>
    %104 = arith.subf %83, %103 : vector<8x128xf32>
    %cst_30 = arith.constant 9.99999974E-6 : f32
    %105 = vector.broadcast %cst_30 : f32 to vector<8x1xf32>
    %106 = arith.addf %102, %105 : vector<8x1xf32>
    %107 = math.rsqrt %106 : vector<8x1xf32>
    %108 = vector.broadcast %107 : vector<8x1xf32> to vector<8x128xf32>
    %109 = arith.mulf %104, %108 : vector<8x128xf32>
    %110 = vector.broadcast %2 : vector<1x128xf32> to vector<8x128xf32>
    %111 = arith.mulf %109, %110 : vector<8x128xf32>
    %112 = vector.broadcast %3 : vector<1x128xf32> to vector<8x128xf32>
    %113 = arith.addf %111, %112 : vector<8x128xf32>
    %114 = vector.broadcast %87 : vector<1x128xf32> to vector<8x128xf32>
    %115 = arith.mulf %113, %114 : vector<8x128xf32>
    %c0_31 = arith.constant 0 : index
    %c0_32 = arith.constant 0 : index
    %116 = vector.load %arg10[%c0_31, %c0_32] : memref<8x128xf32, #tpu.memory_space<vmem>>, vector<8x128xf32>
    tpu.vector_store %arg10[%c0_31, %c0_32], %115 {strides = array<i32>} : memref<8x128xf32, #tpu.memory_space<vmem>>, vector<8x128xf32>,
    return
  }
  func.func @transform_0(%arg0: i32) -> (i32, i32) {
    %c0_i32 = arith.constant 0 : i32
    %c0_i32_0 = arith.constant 0 : i32
    return %arg0, %c0_i32 : i32, i32
  }
  func.func @transform_1(%arg0: i32) -> i32 {
    %c0_i32 = arith.constant 0 : i32
    %c0_i32_0 = arith.constant 0 : i32
    return %c0_i32 : i32
  }
  func.func @transform_2(%arg0: i32) -> i32 {
    %c0_i32 = arith.constant 0 : i32
    %c0_i32_0 = arith.constant 0 : i32
    return %c0_i32 : i32
  }
  func.func @transform_3(%arg0: i32) -> i32 {
    %c0_i32 = arith.constant 0 : i32
    %c0_i32_0 = arith.constant 0 : i32
    return %c0_i32 : i32
  }
  func.func @transform_4(%arg0: i32) -> i32 {
    %c0_i32 = arith.constant 0 : i32
    %c0_i32_0 = arith.constant 0 : i32
    return %c0_i32 : i32
  }
  func.func @transform_5(%arg0: i32) -> (i32, i32) {
    %c0_i32 = arith.constant 0 : i32
    %c0_i32_0 = arith.constant 0 : i32
    %c0_i32_1 = arith.constant 0 : i32
    return %c0_i32, %c0_i32_0 : i32, i32
  }
  func.func @transform_6(%arg0: i32) -> (i32, i32) {
    %c0_i32 = arith.constant 0 : i32
    %c0_i32_0 = arith.constant 0 : i32
    %c0_i32_1 = arith.constant 0 : i32
    return %c0_i32, %c0_i32_0 : i32, i32
  }
  func.func @transform_7(%arg0: i32) -> (i32, i32) {
    %c0_i32 = arith.constant 0 : i32
    %c0_i32_0 = arith.constant 0 : i32
    %c0_i32_1 = arith.constant 0 : i32
    return %c0_i32, %c0_i32_0 : i32, i32
  }
  func.func @transform_8(%arg0: i32) -> (i32, i32) {
    %c0_i32 = arith.constant 0 : i32
    %c0_i32_0 = arith.constant 0 : i32
    return %arg0, %c0_i32 : i32, i32
  }
  func.func @transform_9(%arg0: i32) -> (i32, i32) {
    %c0_i32 = arith.constant 0 : i32
    %c0_i32_0 = arith.constant 0 : i32
    return %arg0, %c0_i32 : i32, i32
  }
}

</mosaic_0001>

<bundles_post_ra>
// kernel: nnstl_forward.1
= control target key start
LH: loop header
LB: loop body
LE: loop exit
PB: predicated region body
PF: predicated region fallthrough
CT: control target
= control target key end

     0   :  { %17 = vsyncpa [#allocation5], 0  ;;  %s520_s0 = inlined_call_operand.vmem [shape: f32[8,128], index: 0, kind: input, shape index: {}]   ;;  %s521_s1 = inlined_call_operand.vmem [shape: f32[5], index: 1, kind: input, shape index: {}]   ;;  %s522_s2 = inlined_call_operand.<no memory space> [shape: f32[1], index: 2, kind: input, shape index: {}]   ;;  %s523_s3 = inlined_call_operand.vmem [shape: f32[30], index: 3, kind: input, shape index: {}]   ;;  %s524_s4 = inlined_call_operand.<no memory space> [shape: f32[1], index: 4, kind: input, shape index: {}]   ;;  %s525_s5 = inlined_call_operand.vmem [shape: f32[1,128], index: 5, kind: input, shape index: {}]   ;;  %s526_s6 = inlined_call_operand.vmem [shape: f32[1,128], index: 6, kind: input, shape index: {}]   ;;  %s527_s7 = inlined_call_operand.vmem [shape: f32[128,128], index: 7, kind: input, shape index: {}]   ;;  %s528_s8 = inlined_call_operand.vmem [shape: f32[8,128], index: 8, kind: output, shape index: {0}]   ;;  %s529_s9 = inlined_call_operand.vmem [shape: f32[8,128], index: 9, kind: output, shape index: {1}]  }
   0x1   :  { %s27_s11 = sshll.u32 %s521_s1, 4  ;;  %s28_s11 = int_to_ptr.vmem [resolvable:$true] %s27_s11 }
   0x2   :  { %18 = vsyncpa [#allocation7], 0  ;;  %s39_s14 = sshll.u32 %s523_s3, 4  ;;  %s351_s15 = scalar_lea.vmem %s28_s11, 16  ;;  %s40_s14 = int_to_ptr.vmem [resolvable:$true] %s39_s14 }
   0x3   :  { %p352_p0 = scmp.ne.s32.totalorder %s28_s11, %s351_s15  ;;  %p356_p1 = scmp.lt.s32.totalorder %s28_s11, %s28_s11 }
   0x4   :  { %p357_p2 = scmp.lt.s32.totalorder %s351_s15, %s351_s15 }
   0x6   :  { %p358_p3 = por %p357_p2, %p356_p1 }
   0x8   :  { %p359_p4 = pnand %p358_p3, %p352_p0 }
   0xa   :  { %362 = shalt.err (!%p359_p4)
}
   0xb   :  { %s379_s16 = smov [#allocation4]   ;;  %s363_s17 = scalar_lea.vmem %s40_s14, 16 }
   0xc   :  { %30 = dma.vmem_to_smem %s28_s11, 16, %s379_s16, [#allocation5]  }
   0xd   :  { %p364_p5 = scmp.ne.s32.totalorder %s40_s14, %s363_s17  ;;  %p368_p6 = scmp.lt.s32.totalorder %s40_s14, %s40_s14 }
   0xe   :  { %p369_p7 = scmp.lt.s32.totalorder %s363_s17, %s363_s17 }
  0x10   :  { %p370_p8 = por %p369_p7, %p368_p6 }
  0x12   :  { %p371_p9 = pnand %p370_p8, %p364_p5 }
  0x14   :  { %374 = shalt.err (!%p371_p9)
}
  0x15   :  { %s380_s1 = smov [#allocation6]  }
  0x16   :  { %42 = dma.vmem_to_smem %s40_s14, 16, %s380_s1, [#allocation7]  }
  0x17   :  { %375 = dma.done.wait [#allocation5], 16  }
  0x18   :  { %376 = vsyncadd [#allocation5], 4294967280 }
  0x19   :  { %377 = dma.done.wait [#allocation7], 16  }
  0x1a   :  { %378 = vsyncadd [#allocation7], 4294967280 }
  0x1b   :  { %57 = sfence }
  0x1c   :  { %v58_v0 = vld [vmem:[%s520_s0] sm:$0xff]  ;;  %s381_s19 = smov 2   ;;  %s382_s20 = smov 127   ;;  %v59_v1 = vlaneseq  ;;  %v108_v24 = vstv %s522_s2  ;;  %v138_v28 = vld [vmem:[%s527_s7 + $0x8] sm:$0xff]  ;;  %v139_v29 = vld [vmem:[%s527_s7 + $0x10] sm:$0xff]  ;;  %v385_v30 = vmov 0.0|0.0  }
  0x1d   :  { %64 = vrot.lane.b32.xlu0 %v58_v0, %s381_s19  ;;  %88 = vrot.lane.b32.xlu1 %v58_v0, %s382_s20  ;;  %s383_s21 = smov 1   ;;  %s384_s22 = smov 126   ;;  %v137_v27 = vld [vmem:[%s527_s7] sm:$0xff]  ;;  %v140_v32 = vld [vmem:[%s527_s7 + $0x18] sm:$0xff]  ;;  %vm386_vm4 = vmmov 0   ;;  %v387_v49 = vmov 0.0  }
  0x1e   :  { %s67_s23 = sld [smem:[#allocation4]]  ;;  %s255_s24 = sld [smem:[#allocation4 + $0x1]]  ;;  %v447_v2 = vand.u32 127, %v59_v1  ;;  %314 = vmatprep.subr.bf16.mxu0 %v385_v30  ;;  %v315_v31 = vpack.c.bf16 %v138_v28, %v137_v27  ;;  %v318_v33 = vpack.c.bf16 %v140_v32, %v139_v29  ;;  %v141_v34 = vld [vmem:[%s527_s7 + $0x20] sm:$0xff]  ;;  %v142_v35 = vld [vmem:[%s527_s7 + $0x28] sm:$0xff]  ;;  %v143_v41 = vld [vmem:[%s527_s7 + $0x30] sm:$0xff]  ;;  %311 = vmatprep.mubr.msk.f32.mxu0 %vm386_vm4, %v387_v49 }
  0x1f   :  { %s256_s25 = sld [smem:[#allocation4 + $0x2]]  ;;  %s257_s26 = sld [smem:[#allocation4 + $0x3]]  ;;  %v321_v36 = vpack.c.bf16 %v142_v35, %v141_v34  ;;  %v144_v42 = vld [vmem:[%s527_s7 + $0x38] sm:$0xff]  ;;  %v145_v44 = vld [vmem:[%s527_s7 + $0x40] sm:$0xff]  ;;  %v146_v45 = vld [vmem:[%s527_s7 + $0x48] sm:$0xff] }
  0x20   :  { %s258_s27 = sld [smem:[#allocation4 + $0x4]]  ;;  %vm66_vm0 = vcmp.ge.s32.totalorder %v447_v2, 2  ;;  %vm76_vm1 = vcmp.ge.s32.totalorder %v447_v2, 1  ;;  %vm90_vm2 = vcmp.lt.s32.totalorder %v447_v2, 127  ;;  %vm100_vm3 = vcmp.lt.s32.totalorder %v447_v2, 126  ;;  %316 = vmatpush3.bf16.msra.mxu0 %v315_v31  ;;  %v147_v47 = vld [vmem:[%s527_s7 + $0x50] sm:$0xff] }
  0x21   :  { %74 = vrot.lane.b32.xlu0 %v58_v0, %s383_s21  ;;  %98 = vrot.lane.b32.xlu1 %v58_v0, %s384_s22  ;;  %v324_v43 = vpack.c.bf16 %v144_v42, %v143_v41  ;;  %v327_v46 = vpack.c.bf16 %v146_v45, %v145_v44  ;;  %v148_v48 = vld [vmem:[%s527_s7 + $0x58] sm:$0xff]  ;;  %v149_v51 = vld [vmem:[%s527_s7 + $0x60] sm:$0xff]  ;;  %vm225_vm5 = vcmp.lt.s32.totalorder %v447_v2, 113 }
  0x22   :  { %317 = vmatprep.subr.bf16.mxu0 %v385_v30  ;;  %v330_v50 = vpack.c.bf16 %v148_v48, %v147_v47  ;;  %v150_v52 = vld [vmem:[%s527_s7 + $0x68] sm:$0xff]  ;;  %v151_v54 = vld [vmem:[%s527_s7 + $0x70] sm:$0xff]  ;;  %v152_v55 = vld [vmem:[%s527_s7 + $0x78] sm:$0xff] }
  0x23   :  { %v333_v53 = vpack.c.bf16 %v150_v52, %v149_v51  ;;  %v336_v56 = vpack.c.bf16 %v152_v55, %v151_v54  ;;  %v259_v61 = vld [vmem:[%s525_s5] ss:$0 sm:$0xff] }
  0x24   :  { %v71_v5 = vstv %s67_s23  ;;  %v81_v7 = vstv %s255_s24  ;;  %319 = vmatpush3.bf16.msra.mxu0 %v318_v33  ;;  %v260_v63 = vld [vmem:[%s526_s6] ss:$0 sm:$0xff] }
  0x25   :  { %v85_v8 = vstv %s256_s25  ;;  %v95_v15 = vstv %s257_s26  ;;  %320 = vmatprep.subr.bf16.mxu0 %v385_v30 }
  0x26   :  { %v86_v14 = vmul.f32 %v85_v8, %v58_v0  ;;  %v105_v17 = vstv %s258_s27 }
  0x28   :  { %322 = vmatpush3.bf16.msra.mxu0 %v321_v36 }
  0x29   :  { %323 = vmatprep.subr.bf16.mxu0 %v385_v30 }
  0x2c   :  { %325 = vmatpush3.bf16.msra.mxu0 %v324_v43 }
  0x2d   :  { %326 = vmatprep.subr.bf16.mxu0 %v385_v30 }
  0x30   :  { %328 = vmatpush3.bf16.msra.mxu0 %v327_v46 }
  0x31   :  { %329 = vmatprep.subr.bf16.mxu0 %v385_v30 }
  0x34   :  { %331 = vmatpush3.bf16.msra.mxu0 %v330_v50 }
  0x35   :  { %332 = vmatprep.subr.bf16.mxu0 %v385_v30 }
  0x38   :  { %334 = vmatpush3.bf16.msra.mxu0 %v333_v53 }
  0x39   :  { %335 = vmatprep.subr.bf16.mxu0 %v385_v30 }
  0x3c   :  { %337 = vmatpush3.bf16.msra.mxu0 %v336_v56 }
  0x8f   :  { %v65_v3 = vpop.permute.xlu0 %64  ;;  %v89_v4 = vpop.permute.xlu1 %88 }
  0x90   :  { %v70_v6 = vsel %vm66_vm0, %v65_v3, 0.0  ;;  %v94_v16 = vsel %vm90_vm2, %v89_v4, 0.0  ;;  %v154_v3 = vstv %s524_s4  ;;  %v261_v4 = vsel %vm225_vm5, 1.0, %v387_v49 }
  0x91   :  { %v72_v12 = vmul.f32 %v71_v5, %v70_v6  ;;  %v96_v21 = vmul.f32 %v95_v15, %v94_v16 }
  0x93   :  { %v75_v9 = vpop.permute.xlu0 %74  ;;  %v99_v11 = vpop.permute.xlu1 %98 }
  0x94   :  { %v80_v10 = vsel %vm76_vm1, %v75_v9, 0.0  ;;  %v104_v18 = vsel %vm100_vm3, %v99_v11, 0.0 }
  0x95   :  { %v82_v13 = vmul.f32 %v81_v7, %v80_v10  ;;  %v106_v22 = vmul.f32 %v105_v17, %v104_v18 }
  0x97   :  { %v83_v19 = vadd.f32 %v82_v13, %v72_v12 }
  0x99   :  { %v87_v20 = vadd.f32 %v86_v14, %v83_v19 }
  0x9b   :  { %v97_v23 = vadd.f32 %v96_v21, %v87_v20 }
  0x9d   :  { %v107_v25 = vadd.f32 %v106_v22, %v97_v23 }
  0x9f   :  { %v109_v26 = vadd.f32 %v108_v24, %v107_v25 }
  0xa1   :  { %110 = vadd.xlane.f32.xlu0 %v109_v26 }
 0x12e   :  { %v111_v37 = vpop.xlane.xlu0 %110 }
 0x12f   :  { %v113_v38 = vmul.f32 0.0078125, %v111_v37 }
 0x131   :  { %v114_v39 = vsub.f32 %v109_v26, %v113_v38 }
 0x133   :  { %v115_v40 = vmul.f32 %v114_v39, %v114_v39 }
 0x135   :  { %116 = vadd.xlane.f32.xlu1 %v115_v40 }
 0x1c2   :  { %v117_v57 = vpop.xlane.xlu1 %116 }
 0x1c3   :  { %v118_v58 = vmul.f32 0.0078125, %v117_v57 }
 0x1c5   :  { %v119_v59 = vadd.f32 1e-05, %v118_v58 }
 0x1c7   :  { %347 = vrsqrt.f32 %v119_v59 }
 0x1d1   :  { %v348_v60 = vpop.eup %347 }
 0x1d2   :  { %v121_v62 = vmul.f32 %v348_v60, %v114_v39 }
 0x1d4   :  { %v128_v0 = vmul.f32 %v259_v61, %v121_v62 }
 0x1d6   :  { %v135_v1 = vadd.f32 %v260_v63, %v128_v0 }
 0x1d8   :  { %136 = vst [vmem:[%s528_s8] sm:$0xff] %v135_v1  ;;  %312 = vmatmul.mubr.f32.vlgmr.msra.gmra.mrb[0].mxu0 %v135_v1 }
 0x2ab   :  { %v221_v5 = vpop.f32.mrb[0].mxu0 }
 0x2ac   :  { %v222_v6 = vadd.f32 %v221_v5, %v154_v3  ;;  %v313_v7 = vpop.f32.mrb[1].mxu0 }
 0x2ae   :  { %v228_v8 = vmul.f32 %v261_v4, %v222_v6 }
 0x2b0   :  { %229 = vadd.xlane.f32.xlu0 %v228_v8 }
 0x33d   :  { %v230_v9 = vpop.xlane.xlu0 %229 }
 0x33e   :  { %v231_v10 = vmul.f32 0.0088495575, %v230_v9 }
 0x340   :  { %v232_v11 = vsub.f32 %v222_v6, %v231_v10 }
 0x342   :  { %v233_v12 = vmul.f32 %v261_v4, %v232_v11 }
 0x344   :  { %v234_v13 = vmul.f32 %v233_v12, %v233_v12 }
 0x346   :  { %235 = vadd.xlane.f32.xlu0 %v234_v13 }
 0x3d3   :  { %v236_v14 = vpop.xlane.xlu0 %235 }
 0x3d4   :  { %v237_v15 = vmul.f32 0.0088495575, %v236_v14 }
 0x3d6   :  { %v238_v16 = vadd.f32 1e-05, %v237_v15 }
 0x3d8   :  { %349 = vrsqrt.f32 %v238_v16 }
 0x3e2   :  { %v350_v2 = vpop.eup %349 }
 0x3e3   :  { %v240_v17 = vmul.f32 %v350_v2, %v232_v11 }
 0x3e5   :  { %v241_v18 = vmul.f32 %v259_v61, %v240_v17 }
 0x3e7   :  { %v242_v19 = vadd.f32 %v260_v63, %v241_v18 }
 0x3e9   :  { %v243_v20 = vmul.f32 %v261_v4, %v242_v19 }
 0x3eb   :  { %244 = vst [vmem:[%s529_s9] sm:$0xff] %v243_v20 }
 0x3ec   :  { %253 = vsyncpa [#allocation5], 1 }
 0x3ed   :  { %254 = vsyncpa [#allocation7], 1 }

</bundles_post_ra>
